<compile_context>
chip_gen: v5e
topology: v5e:2x2
jax: 0.10.0
libtpu: 0.0.40
codegen_flags: <defaults>
</compile_context>

<pallas_src>
import jax
import jax.numpy as jnp
from jax import lax
from jax.experimental import pallas as pl
from jax.experimental.pallas import tpu as pltpu
import numpy as np


def _round_up(x, mult):
    return (x + mult - 1) // mult * mult


def _vmem_budget():
    """Returns (vmem_limit_bytes, tile-sizing budget) for the local chip."""
    try:
        cap = int(pltpu.get_tpu_info().vmem_capacity_bytes)
    except Exception:
        cap = 64 * 1024 * 1024                     # conservative (v7x-sized)
    vmem_limit = min(int(cap * 0.85), 100 * 1024 * 1024)
    budget = int(vmem_limit * 0.85)                # ~46 MiB v7x, ~85 MiB v5e/v6e
    return vmem_limit, budget


def _auto_block_m(m, k_pad, c_pad, out_bytes, budget):
    # Per-step VMEM of the worst pass (everything double-buffered):
    #   patches tile : 2 * bm * k_pad * 2            (bf16)
    #   y / out tile : 2 * bm * c_pad * (2 + out_bytes)
    # plus the double-buffered resident weight (+ ~1 MiB slack for stats etc.)
    fixed = 2 * k_pad * c_pad * 2 + (1 << 20)
    per_row = 2 * (2 * k_pad + (2 + out_bytes) * c_pad)
    bm = max((budget - fixed) // per_row, 256)
    bm = min(bm, 2048, _round_up(pl.cdiv(m, 2), 256))
    return int(max((bm // 256) * 256, 256))


# ---------------------------------------------------------------------------
# Pass 1 (stored-y path): conv matmul, store y (bf16), accumulate per-channel
# sum / sum-of-squares.  Grid = (split, m_tiles); the stats accumulators stay
# resident across the inner "arbitrary" axis, one (8, C_pad) row-block per
# outer "parallel" split (each v7x TensorCore owns its own accumulator block;
# the 8 rows exist only to satisfy the (8,128) block rule -- row 0 is used).
# ---------------------------------------------------------------------------
def _conv_store_stats_kernel(patches_ref, w_ref, y_ref, sum_ref, sumsq_ref):
    @pl.when(pl.program_id(1) == 0)
    def _init():
        sum_ref[...] = jnp.zeros_like(sum_ref)
        sumsq_ref[...] = jnp.zeros_like(sumsq_ref)

    y = jnp.dot(patches_ref[...], w_ref[...], preferred_element_type=jnp.float32)
    y_ref[...] = y.astype(y_ref.dtype)
    sum_ref[0:1, :] += jnp.sum(y, axis=0, keepdims=True)
    sumsq_ref[0:1, :] += jnp.sum(y * y, axis=0, keepdims=True)


# Pass 1 (recompute path): same, but y is not written back to HBM.
def _conv_stats_kernel(patches_ref, w_ref, sum_ref, sumsq_ref):
    @pl.when(pl.program_id(1) == 0)
    def _init():
        sum_ref[...] = jnp.zeros_like(sum_ref)
        sumsq_ref[...] = jnp.zeros_like(sumsq_ref)

    y = jnp.dot(patches_ref[...], w_ref[...], preferred_element_type=jnp.float32)
    sum_ref[0:1, :] += jnp.sum(y, axis=0, keepdims=True)
    sumsq_ref[0:1, :] += jnp.sum(y * y, axis=0, keepdims=True)


# ---------------------------------------------------------------------------
# Pass 2 (stored-y path): read bf16 y -> folded BN affine -> ReLU.
# ---------------------------------------------------------------------------
def _bn_relu_kernel(y_ref, scale_ref, shift_ref, o_ref):
    y = y_ref[...].astype(jnp.float32)
    o_ref[...] = jnp.maximum(y * scale_ref[...] + shift_ref[...],
                             0.0).astype(o_ref.dtype)


# ---------------------------------------------------------------------------
# Pass 2 (recompute path): matmul -> folded BN affine -> ReLU.
# ---------------------------------------------------------------------------
def _conv_bn_relu_kernel(patches_ref, w_ref, scale_ref, shift_ref, o_ref):
    y = jnp.dot(patches_ref[...], w_ref[...], preferred_element_type=jnp.float32)
    o_ref[...] = jnp.maximum(y * scale_ref[...] + shift_ref[...],
                             0.0).astype(o_ref.dtype)


def _im2col(x, kh, kw, stride, pad):
    """x: (N, C, H, W) -> patches (N*Ho*Wo, C*kh*kw) in x.dtype, plus Ho, Wo."""
    n, c, h, w = x.shape
    xp = jnp.pad(x, ((0, 0), (0, 0), (pad, pad), (pad, pad)))
    ho = (h + 2 * pad - kh) // stride + 1
    wo = (w + 2 * pad - kw) // stride + 1
    cols = []
    for i in range(kh):
        for j in range(kw):
            cols.append(xp[:, :, i:i + stride * ho:stride, j:j + stride * wo:stride])
    # (N, C, kh*kw, Ho, Wo); flatten order matches the OIHW weight flatten.
    patches = jnp.stack(cols, axis=2)
    patches = patches.transpose(0, 3, 4, 1, 2).reshape(n * ho * wo, c * kh * kw)
    return patches, ho, wo


def basic_conv2d(x, conv_weight, bn_gamma, bn_beta, *, stride=1, padding=1,
                 eps=1e-3, block_m=None, store_y=None,
                 compute_dtype=jnp.bfloat16, out_dtype=jnp.bfloat16):
    """Forward of BasicConv2d.  x: (N, C_in, H, W) NCHW.  Returns NCHW
    in `out_dtype` (bf16 by default to halve the largest HBM write; pass
    out_dtype=jnp.float32 for full-precision stores).

    block_m: rows of the M (=N*Ho*Wo) tile; None -> sized from a VMEM budget.
    store_y: None -> auto (store the conv output between passes iff
             K_pad > 2*C_pad, otherwise recompute the cheap matmul in pass 2).
    """
    n, c_in, h, w = x.shape
    c_out, _, kh, kw = conv_weight.shape
    k = c_in * kh * kw

    k_pad = _round_up(k, 128)
    c_pad = _round_up(c_out, 128)
    out_bytes = jnp.dtype(out_dtype).itemsize
    vmem_limit, budget = _vmem_budget()

    # im2col in bf16 (halves HBM traffic of the KH*KW-expanded patches array).
    patches, ho, wo = _im2col(x.astype(compute_dtype), kh, kw, stride, padding)
    m = patches.shape[0]

    if block_m is None:
        block_m = _auto_block_m(m, k_pad, c_pad, out_bytes, budget)
    else:
        block_m = _round_up(max(block_m, 128), 128)
    if store_y is None:
        store_y = k_pad > 2 * c_pad

    num_splits = 2 if m > block_m else 1          # pass-1 megacore split (v7x)
    m_pad = _round_up(m, block_m * num_splits)
    grid_m = m_pad // block_m
    grid_inner = grid_m // num_splits

    # Zero-pad rows / K columns: padded entries contribute nothing to the
    # matmul or the statistics.  (Under jit, XLA fuses this pad into the
    # im2col transpose copy -- one materialization of the patches array.)
    patches = jnp.pad(patches, ((0, m_pad - m), (0, k_pad - k)))
    w_kc = conv_weight.reshape(c_out, k).T.astype(compute_dtype)    # (K, C_out)
    w_kc = jnp.pad(w_kc, ((0, k_pad - k), (0, c_pad - c_out)))      # (K_pad, C_pad)

    patches_bytes = m_pad * k_pad * 2
    w_bytes = k_pad * c_pad * 2
    y_bytes = m_pad * c_pad * 2
    out_bytes_total = m_pad * c_pad * out_bytes
    matmul_flops = 2 * m_pad * k_pad * c_pad
    stats_flops = 3 * m_pad * c_pad

    params_p1 = pltpu.CompilerParams(
        dimension_semantics=("parallel", "arbitrary"),
        vmem_limit_bytes=vmem_limit)
    params_p2 = pltpu.CompilerParams(
        dimension_semantics=("parallel",),
        vmem_limit_bytes=vmem_limit)

    # ----------------- pass 1: matmul + global per-channel batch stats -------
    patches_spec1 = pl.BlockSpec((block_m, k_pad),
                                 lambda j, i: (j * grid_inner + i, 0))
    w_spec1 = pl.BlockSpec((k_pad, c_pad), lambda j, i: (0, 0))
    stats_shape = jax.ShapeDtypeStruct((num_splits * 8, c_pad), jnp.float32)
    stats_spec = pl.BlockSpec((8, c_pad), lambda j, i: (j, 0))

    if store_y:
        y_store, sum_y, sumsq_y = pl.pallas_call(
            _conv_store_stats_kernel,
            out_shape=(jax.ShapeDtypeStruct((m_pad, c_pad), jnp.bfloat16),
                       stats_shape, stats_shape),
            grid_spec=pltpu.PrefetchScalarGridSpec(
                num_scalar_prefetch=0,
                grid=(num_splits, grid_inner),
                in_specs=[patches_spec1, w_spec1],
                out_specs=[
                    pl.BlockSpec((block_m, c_pad),
                                 lambda j, i: (j * grid_inner + i, 0)),
                    stats_spec, stats_spec,
                ],
            ),
            compiler_params=params_p1,
            cost_estimate=pl.CostEstimate(
                flops=matmul_flops + stats_flops, transcendentals=0,
                bytes_accessed=patches_bytes + w_bytes + y_bytes
                               + 4 * num_splits * 8 * c_pad * 4),
        )(patches, w_kc)
    else:
        sum_y, sumsq_y = pl.pallas_call(
            _conv_stats_kernel,
            out_shape=(stats_shape, stats_shape),
            grid_spec=pltpu.PrefetchScalarGridSpec(
                num_scalar_prefetch=0,
                grid=(num_splits, grid_inner),
                in_specs=[patches_spec1, w_spec1],
                out_specs=[stats_spec, stats_spec],
            ),
            compiler_params=params_p1,
            cost_estimate=pl.CostEstimate(
                flops=matmul_flops + stats_flops, transcendentals=0,
                bytes_accessed=patches_bytes + w_bytes
                               + 4 * num_splits * 8 * c_pad * 4),
        )(patches, w_kc)

    # ----------- fold BN (training mode, biased variance) into scale/shift ---
    inv_m = 1.0 / float(m)                                   # true element count
    mean = jnp.sum(sum_y, axis=0) * inv_m                    # (C_pad,)
    var = jnp.maximum(jnp.sum(sumsq_y, axis=0) * inv_m - mean * mean, 0.0)
    gamma_p = jnp.pad(bn_gamma.astype(jnp.float32), (0, c_pad - c_out))
    beta_p = jnp.pad(bn_beta.astype(jnp.float32), (0, c_pad - c_out))
    scale_row = gamma_p * lax.rsqrt(var + eps)               # padded lanes -> 0
    shift_row = beta_p - mean * scale_row
    scale = scale_row.reshape(1, c_pad)
    shift = shift_row.reshape(1, c_pad)

    # ----------------- pass 2: y*scale + shift, ReLU (parallel over M) -------
    bcast_spec = pl.BlockSpec((1, c_pad), lambda i: (0, 0))
    out_spec = pl.BlockSpec((block_m, c_pad), lambda i: (i, 0))

    if store_y:
        out_flat = pl.pallas_call(
            _bn_relu_kernel,
            out_shape=jax.ShapeDtypeStruct((m_pad, c_pad), out_dtype),
            grid_spec=pltpu.PrefetchScalarGridSpec(
                num_scalar_prefetch=0,
                grid=(grid_m,),
                in_specs=[
                    pl.BlockSpec((block_m, c_pad), lambda i: (i, 0)),  # y tile
                    bcast_spec, bcast_spec,                            # scale/shift
                ],
                out_specs=out_spec,
            ),
            compiler_params=params_p2,
            cost_estimate=pl.CostEstimate(
                flops=stats_flops, transcendentals=0,
                bytes_accessed=y_bytes + out_bytes_total + 2 * c_pad * 4),
        )(y_store, scale, shift)
    else:
        out_flat = pl.pallas_call(
            _conv_bn_relu_kernel,
            out_shape=jax.ShapeDtypeStruct((m_pad, c_pad), out_dtype),
            grid_spec=pltpu.PrefetchScalarGridSpec(
                num_scalar_prefetch=0,
                grid=(grid_m,),
                in_specs=[
                    pl.BlockSpec((block_m, k_pad), lambda i: (i, 0)),  # patches
                    pl.BlockSpec((k_pad, c_pad), lambda i: (0, 0)),    # weight
                    bcast_spec, bcast_spec,                            # scale/shift
                ],
                out_specs=out_spec,
            ),
            compiler_params=params_p2,
            cost_estimate=pl.CostEstimate(
                flops=matmul_flops + stats_flops, transcendentals=0,
                bytes_accessed=patches_bytes + w_bytes + out_bytes_total
                               + 2 * c_pad * 4),
        )(patches, w_kc, scale, shift)

    # (M_pad, C_pad) -> (N, C_out, Ho, Wo)
    # TODO(synk): keep NHWC end-to-end (or fuse into the consumer) to avoid
    # this final layout transpose -- one extra HBM read+write of the output.
    out = out_flat[:m, :c_out].reshape(n, ho, wo, c_out).transpose(0, 3, 1, 2)
    return out


def _reference(x, conv_weight, bn_gamma, bn_beta, *, stride=1, padding=1,
               eps=1e-3, compute_dtype=jnp.bfloat16):
    # Match the kernel's bf16 MXU operand quantization (f32 accumulation).
    xq = x.astype(compute_dtype).astype(jnp.float32)
    wq = conv_weight.astype(compute_dtype).astype(jnp.float32)
    y = lax.conv_general_dilated(
        xq, wq,
        window_strides=(stride, stride),
        padding=((padding, padding), (padding, padding)),
        dimension_numbers=("NCHW", "OIHW", "NCHW"))
    mean = y.mean(axis=(0, 2, 3), keepdims=True)
    var = ((y - mean) ** 2).mean(axis=(0, 2, 3), keepdims=True)
    yn = (y - mean) * lax.rsqrt(var + eps)
    yn = yn * bn_gamma.reshape(1, -1, 1, 1) + bn_beta.reshape(1, -1, 1, 1)
    return jnp.maximum(yn, 0.0)


if __name__ == "__main__":
    # Small deterministic config consistent with BasicConv2d(4, 8,
    # kernel_size=3, stride=1, padding=1).
    N, C_IN, H, W = 2, 4, 16, 16
    C_OUT, KH, KW = 8, 3, 3

    key = jax.random.PRNGKey(0)
    kx, kw_, kg, kb = jax.random.split(key, 4)
    x = jax.random.normal(kx, (N, C_IN, H, W), dtype=jnp.float32)
    conv_weight = 0.1 * jax.random.normal(kw_, (C_OUT, C_IN, KH, KW), dtype=jnp.float32)
    bn_gamma = 1.0 + 0.1 * jax.random.normal(kg, (C_OUT,), dtype=jnp.float32)
    bn_beta = 0.1 * jax.random.normal(kb, (C_OUT,), dtype=jnp.float32)

    ref = jax.block_until_ready(
        _reference(x, conv_weight, bn_gamma, bn_beta, stride=1, padding=1))

    # block_m=128 at this toy size (M = 2*16*16 = 512) exercises the 2-way
    # parallel split and a multi-step inner accumulation grid; run both the
    # stored-y and the matmul-recompute paths.
    for store_y in (True, False):
        fwd = jax.jit(lambda a, b, c, d, s=store_y: basic_conv2d(
            a, b, c, d, stride=1, padding=1, block_m=128, store_y=s))
        out = jax.block_until_ready(fwd(x, conv_weight, bn_gamma, bn_beta))
        np.testing.assert_allclose(np.asarray(out.astype(jnp.float32)),
                                   np.asarray(ref), rtol=1e-2, atol=1e-2)

    # Auto block_m / auto path selection (exercises the VMEM-budget sizing).
    fwd_auto = jax.jit(lambda a, b, c, d: basic_conv2d(
        a, b, c, d, stride=1, padding=1))
    out = jax.block_until_ready(fwd_auto(x, conv_weight, bn_gamma, bn_beta))
    np.testing.assert_allclose(np.asarray(out.astype(jnp.float32)),
                               np.asarray(ref), rtol=1e-2, atol=1e-2)

    print("KERNEL_OK")
</pallas_src>

<mosaic_0001>
module attributes {stable_mosaic.version = 11 : i64} {
  func.func @_conv_store_stats_kernel(%arg0: i32, %arg1: i32, %arg2: memref<128x128xbf16, #tpu.memory_space<vmem>>, %arg3: memref<128x128xbf16, #tpu.memory_space<vmem>>, %arg4: memref<128x128xbf16, #tpu.memory_space<vmem>>, %arg5: memref<8x128xf32, #tpu.memory_space<vmem>>, %arg6: memref<8x128xf32, #tpu.memory_space<vmem>>) attributes {dimension_semantics = [#tpu.dimension_semantics<parallel>, #tpu.dimension_semantics<arbitrary>], iteration_bounds = array<i64: 2, 2>, scalar_prefetch = 0 : i64, scratch_operands = 0 : i64, tpu.core_type = #tpu.core_type<tc>, window_params = [{transform_indices = @transform_0, window_bounds = array<i64: 128, 128>}, {pipeline_mode = #tpu.pipeline_mode<synchronous>, transform_indices = @transform_1, window_bounds = array<i64: 128, 128>}, {transform_indices = @transform_2, window_bounds = array<i64: 128, 128>}, {transform_indices = @transform_3, window_bounds = array<i64: 8, 128>}, {transform_indices = @transform_4, window_bounds = array<i64: 8, 128>}]} {
    %c0_i32 = arith.constant 0 : i32
    %0 = arith.cmpi eq, %arg1, %c0_i32 : i32
    %1 = arith.extui %0 : i1 to i32
    %c0_i32_0 = arith.constant 0 : i32
    %2 = arith.cmpi ne, %1, %c0_i32_0 : i32
    scf.if %2 {
      %cst_16 = arith.constant 0.000000e+00 : f32
      %19 = vector.broadcast %cst_16 : f32 to vector<8x128xf32>
      %c0_17 = arith.constant 0 : index
      %c0_18 = arith.constant 0 : index
      %20 = vector.load %arg5[%c0_17, %c0_18] : memref<8x128xf32, #tpu.memory_space<vmem>>, vector<8x128xf32>
      tpu.vector_store %arg5[%c0_17, %c0_18], %19 {strides = array<i32>} : memref<8x128xf32, #tpu.memory_space<vmem>>, vector<8x128xf32>,
      %cst_19 = arith.constant 0.000000e+00 : f32
      %21 = vector.broadcast %cst_19 : f32 to vector<8x128xf32>
      %c0_20 = arith.constant 0 : index
      %c0_21 = arith.constant 0 : index
      %22 = vector.load %arg6[%c0_20, %c0_21] : memref<8x128xf32, #tpu.memory_space<vmem>>, vector<8x128xf32>
      tpu.vector_store %arg6[%c0_20, %c0_21], %21 {strides = array<i32>} : memref<8x128xf32, #tpu.memory_space<vmem>>, vector<8x128xf32>,
    } else {
    }
    %c0 = arith.constant 0 : index
    %c0_1 = arith.constant 0 : index
    %3 = vector.load %arg2[%c0, %c0_1] : memref<128x128xbf16, #tpu.memory_space<vmem>>, vector<128x128xbf16>
    %c0_2 = arith.constant 0 : index
    %c0_3 = arith.constant 0 : index
    %4 = vector.load %arg3[%c0_2, %c0_3] : memref<128x128xbf16, #tpu.memory_space<vmem>>, vector<128x128xbf16>
    %cst = arith.constant dense<0.000000e+00> : vector<128x128xf32>
    %5 = tpu.matmul %3, %4, %cst {dimension_numbers = #tpu.dot_dimension_numbers<[1], [0], [0], [1], [0, 0, 1, 1], [], []>} : vector<128x128xbf16>, vector<128x128xbf16>, vector<128x128xf32> -> vector<128x128xf32>
    %6 = arith.truncf %5 : vector<128x128xf32> to vector<128x128xbf16>
    %c0_4 = arith.constant 0 : index
    %c0_5 = arith.constant 0 : index
    %7 = vector.load %arg4[%c0_4, %c0_5] : memref<128x128xbf16, #tpu.memory_space<vmem>>, vector<128x128xbf16>
    tpu.vector_store %arg4[%c0_4, %c0_5], %6 {strides = array<i32>} : memref<128x128xbf16, #tpu.memory_space<vmem>>, vector<128x128xbf16>,
    %c0_6 = arith.constant 0 : index
    %c0_7 = arith.constant 0 : index
    %8 = vector.load %arg5[%c0_6, %c0_7] : memref<8x128xf32, #tpu.memory_space<vmem>>, vector<1x128xf32>
    %cst_8 = arith.constant dense<0.000000e+00> : vector<128xf32>
    %9 = vector.multi_reduction <add>, %5, %cst_8 [0] : vector<128x128xf32> to vector<128xf32>
    %10 = vector.shape_cast %9 : vector<128xf32> to vector<1x128xf32>
    %11 = arith.addf %8, %10 : vector<1x128xf32>
    %c0_9 = arith.constant 0 : index
    %c0_10 = arith.constant 0 : index
    %12 = vector.load %arg5[%c0_9, %c0_10] : memref<8x128xf32, #tpu.memory_space<vmem>>, vector<1x128xf32>
    tpu.vector_store %arg5[%c0_9, %c0_10], %11 {strides = array<i32>} : memref<8x128xf32, #tpu.memory_space<vmem>>, vector<1x128xf32>,
    %c0_11 = arith.constant 0 : index
    %c0_12 = arith.constant 0 : index
    %13 = vector.load %arg6[%c0_11, %c0_12] : memref<8x128xf32, #tpu.memory_space<vmem>>, vector<1x128xf32>
    %14 = arith.mulf %5, %5 : vector<128x128xf32>
    %cst_13 = arith.constant dense<0.000000e+00> : vector<128xf32>
    %15 = vector.multi_reduction <add>, %14, %cst_13 [0] : vector<128x128xf32> to vector<128xf32>
    %16 = vector.shape_cast %15 : vector<128xf32> to vector<1x128xf32>
    %17 = arith.addf %13, %16 : vector<1x128xf32>
    %c0_14 = arith.constant 0 : index
    %c0_15 = arith.constant 0 : index
    %18 = vector.load %arg6[%c0_14, %c0_15] : memref<8x128xf32, #tpu.memory_space<vmem>>, vector<1x128xf32>
    tpu.vector_store %arg6[%c0_14, %c0_15], %17 {strides = array<i32>} : memref<8x128xf32, #tpu.memory_space<vmem>>, vector<1x128xf32>,
    return
  }
  func.func @transform_0(%arg0: i32, %arg1: i32) -> (i32, i32) {
    %c2_i32 = arith.constant 2 : i32
    %0 = arith.muli %arg0, %c2_i32 : i32
    %1 = arith.addi %0, %arg1 : i32
    %c0_i32 = arith.constant 0 : i32
    %c0_i32_0 = arith.constant 0 : i32
    return %1, %c0_i32 : i32, i32
  }
  func.func @transform_1(%arg0: i32, %arg1: i32) -> (i32, i32) {
    %c0_i32 = arith.constant 0 : i32
    %c0_i32_0 = arith.constant 0 : i32
    %c0_i32_1 = arith.constant 0 : i32
    return %c0_i32, %c0_i32_0 : i32, i32
  }
  func.func @transform_2(%arg0: i32, %arg1: i32) -> (i32, i32) {
    %c2_i32 = arith.constant 2 : i32
    %0 = arith.muli %arg0, %c2_i32 : i32
    %1 = arith.addi %0, %arg1 : i32
    %c0_i32 = arith.constant 0 : i32
    %c0_i32_0 = arith.constant 0 : i32
    return %1, %c0_i32 : i32, i32
  }
  func.func @transform_3(%arg0: i32, %arg1: i32) -> (i32, i32) {
    %c0_i32 = arith.constant 0 : i32
    %c0_i32_0 = arith.constant 0 : i32
    return %arg0, %c0_i32 : i32, i32
  }
  func.func @transform_4(%arg0: i32, %arg1: i32) -> (i32, i32) {
    %c0_i32 = arith.constant 0 : i32
    %c0_i32_0 = arith.constant 0 : i32
    return %arg0, %c0_i32 : i32, i32
  }
}

module attributes {stable_mosaic.version = 11 : i64} {
  func.func @_bn_relu_kernel(%arg0: i32, %arg1: memref<128x128xbf16, #tpu.memory_space<vmem>>, %arg2: memref<1x128xf32, #tpu.memory_space<vmem>>, %arg3: memref<1x128xf32, #tpu.memory_space<vmem>>, %arg4: memref<128x128xbf16, #tpu.memory_space<vmem>>) attributes {dimension_semantics = [#tpu.dimension_semantics<parallel>], iteration_bounds = array<i64: 4>, scalar_prefetch = 0 : i64, scratch_operands = 0 : i64, tpu.core_type = #tpu.core_type<tc>, window_params = [{transform_indices = @transform_0, window_bounds = array<i64: 128, 128>}, {pipeline_mode = #tpu.pipeline_mode<synchronous>, transform_indices = @transform_1, window_bounds = array<i64: 1, 128>}, {pipeline_mode = #tpu.pipeline_mode<synchronous>, transform_indices = @transform_2, window_bounds = array<i64: 1, 128>}, {transform_indices = @transform_3, window_bounds = array<i64: 128, 128>}]} {
    %c0 = arith.constant 0 : index
    %c0_0 = arith.constant 0 : index
    %0 = vector.load %arg1[%c0, %c0_0] : memref<128x128xbf16, #tpu.memory_space<vmem>>, vector<128x128xbf16>
    %1 = arith.extf %0 : vector<128x128xbf16> to vector<128x128xf32>
    %c0_1 = arith.constant 0 : index
    %c0_2 = arith.constant 0 : index
    %2 = vector.load %arg2[%c0_1, %c0_2] : memref<1x128xf32, #tpu.memory_space<vmem>>, vector<1x128xf32>
    %3 = vector.broadcast %2 : vector<1x128xf32> to vector<128x128xf32>
    %4 = arith.mulf %1, %3 : vector<128x128xf32>
    %c0_3 = arith.constant 0 : index
    %c0_4 = arith.constant 0 : index
    %5 = vector.load %arg3[%c0_3, %c0_4] : memref<1x128xf32, #tpu.memory_space<vmem>>, vector<1x128xf32>
    %6 = vector.broadcast %5 : vector<1x128xf32> to vector<128x128xf32>
    %7 = arith.addf %4, %6 : vector<128x128xf32>
    %cst = arith.constant 0.000000e+00 : f32
    %8 = vector.broadcast %cst : f32 to vector<128x128xf32>
    %9 = arith.maximumf %7, %8 : vector<128x128xf32>
    %10 = arith.truncf %9 : vector<128x128xf32> to vector<128x128xbf16>
    %c0_5 = arith.constant 0 : index
    %c0_6 = arith.constant 0 : index
    %11 = vector.load %arg4[%c0_5, %c0_6] : memref<128x128xbf16, #tpu.memory_space<vmem>>, vector<128x128xbf16>
    tpu.vector_store %arg4[%c0_5, %c0_6], %10 {strides = array<i32>} : memref<128x128xbf16, #tpu.memory_space<vmem>>, vector<128x128xbf16>,
    return
  }
  func.func @transform_0(%arg0: i32) -> (i32, i32) {
    %c0_i32 = arith.constant 0 : i32
    %c0_i32_0 = arith.constant 0 : i32
    return %arg0, %c0_i32 : i32, i32
  }
  func.func @transform_1(%arg0: i32) -> (i32, i32) {
    %c0_i32 = arith.constant 0 : i32
    %c0_i32_0 = arith.constant 0 : i32
    %c0_i32_1 = arith.constant 0 : i32
    return %c0_i32, %c0_i32_0 : i32, i32
  }
  func.func @transform_2(%arg0: i32) -> (i32, i32) {
    %c0_i32 = arith.constant 0 : i32
    %c0_i32_0 = arith.constant 0 : i32
    %c0_i32_1 = arith.constant 0 : i32
    return %c0_i32, %c0_i32_0 : i32, i32
  }
  func.func @transform_3(%arg0: i32) -> (i32, i32) {
    %c0_i32 = arith.constant 0 : i32
    %c0_i32_0 = arith.constant 0 : i32
    return %arg0, %c0_i32 : i32, i32
  }
}

</mosaic_0001>

<bundles_post_ra>
// kernel: _lambda_.3
= control target key start
LH: loop header
LB: loop body
LE: loop exit
PB: predicated region body
PF: predicated region fallthrough
CT: control target
= control target key end

     0   :  { %s485_s12 = smov 0   ;;  %s571_s0 = inlined_call_operand.vmem [shape: bf16[512,128], index: 0, kind: input, shape index: {}]   ;;  %s572_s1 = inlined_call_operand.vmem [shape: f32[1,128], index: 1, kind: input, shape index: {}]   ;;  %s573_s2 = inlined_call_operand.vmem [shape: f32[1,128], index: 2, kind: input, shape index: {}]   ;;  %s574_s3 = inlined_call_operand.vmem [shape: bf16[512,128], index: 3, kind: output, shape index: {}]  }
   0x1 LB: > { %s350_s13 = sadd.s32 4294967295, %s463_s12   ;;  %p354_p0 = scmp.ge.s32.totalorder %s463_s12, 1  ;;  %s463_s12 = sphi %s485_s12, %s13_s12  }
   0x2   : > { %p138_p1 = scmp.lt.s32.totalorder %s463_s12, 5 }
   0x4   : > { %p139_p2 = pnand %p354_p0, %p138_p1 }
   0x5   : > { %s355_s14 = sshll.u32 (!%p139_p2), %s350_s13, 4 }
   0x6   : > { %142 = sbr.rel (%p139_p2) target bundleno = 37 (0x25), region = 32  ;;  %p163_p3 = scmp.lt.s32.totalorder (!%p139_p2), %s355_s14, 63 }
   0xb   : > { %s576_s14 = smov (!%p163_p3, %s355_s14), 63  ;;  %v506_v0 = vld [vmem:[%s572_s1] ss:$0 sm:$0xff] }
   0xc   : > { %s356_s15 = sshll.u32 %s576_s14, 2  ;;  %v514_v6 = vld [vmem:[%s573_s2] ss:$0 sm:$0xff] }
   0xd   : > { %s501_s18 = scalar_lea.vmem %s571_s0, %s356_s15  ;;  %s540_s25 = scalar_lea.vmem %s574_s3, %s356_s15 }
   0xe   : > { %v362_v1 = vld [vmem:[%s501_s18] sm:$0xff]   ;;  %v433_v2 = vld [vmem:[%s501_s18 + $0x8] sm:$0xff]   ;;  %v434_v3 = vld [vmem:[%s501_s18 + $0x10] sm:$0xff]  }
   0xf   : > { %v363_v4 = vunpack.c.l.bf16 %v362_v1  ;;  %v364_v5 = vunpack.c.h.bf16 %v362_v1  ;;  %v367_v7 = vunpack.c.l.bf16 %v433_v2  ;;  %v368_v8 = vunpack.c.h.bf16 %v433_v2  ;;  %v435_v9 = vld [vmem:[%s501_s18 + $0x18] sm:$0xff]   ;;  %v436_v30 = vld [vmem:[%s501_s18 + $0x20] sm:$0xff]   ;;  %v437_v35 = vld [vmem:[%s501_s18 + $0x28] sm:$0xff]  }
  0x10   : > { %v371_v10 = vunpack.c.l.bf16 %v434_v3  ;;  %v372_v11 = vunpack.c.h.bf16 %v434_v3  ;;  %v375_v12 = vunpack.c.l.bf16 %v435_v9  ;;  %v376_v13 = vunpack.c.h.bf16 %v435_v9  ;;  %v438_v40 = vld [vmem:[%s501_s18 + $0x30] sm:$0xff]   ;;  %v439_v45 = vld [vmem:[%s501_s18 + $0x38] sm:$0xff]  }
  0x11   : > { %v210_v14 = vmul.f32 %v506_v0, %v363_v4  ;;  %v211_v15 = vmul.f32 %v506_v0, %v364_v5  ;;  %v212_v16 = vmul.f32 %v506_v0, %v367_v7  ;;  %v213_v17 = vmul.f32 %v506_v0, %v368_v8 }
  0x12   : > { %v214_v18 = vmul.f32 %v506_v0, %v371_v10  ;;  %v215_v19 = vmul.f32 %v506_v0, %v372_v11  ;;  %v216_v20 = vmul.f32 %v506_v0, %v375_v12  ;;  %v217_v21 = vmul.f32 %v506_v0, %v376_v13 }
  0x13   : > { %v230_v22 = vadd.f32 %v514_v6, %v210_v14  ;;  %v231_v23 = vadd.f32 %v514_v6, %v211_v15  ;;  %v232_v24 = vadd.f32 %v514_v6, %v212_v16  ;;  %v233_v25 = vadd.f32 %v514_v6, %v213_v17 }
  0x14   : > { %v234_v26 = vadd.f32 %v514_v6, %v214_v18  ;;  %v235_v27 = vadd.f32 %v514_v6, %v215_v19  ;;  %v236_v28 = vadd.f32 %v514_v6, %v216_v20  ;;  %v237_v29 = vadd.f32 %v514_v6, %v217_v21 }
  0x15   : > { %v246_v31 = vmax.f32 %v230_v22, 0.0  ;;  %v247_v32 = vmax.f32 %v231_v23, 0.0  ;;  %v248_v33 = vmax.f32 %v232_v24, 0.0  ;;  %v249_v34 = vmax.f32 %v233_v25, 0.0 }
  0x16   : > { %v250_v36 = vmax.f32 %v234_v26, 0.0  ;;  %v251_v37 = vmax.f32 %v235_v27, 0.0  ;;  %v252_v38 = vmax.f32 %v236_v28, 0.0  ;;  %v253_v39 = vmax.f32 %v237_v29, 0.0 }
  0x17   : > { %v396_v41 = vpack.c.bf16 %v247_v32, %v246_v31  ;;  %v401_v42 = vpack.c.bf16 %v249_v34, %v248_v33  ;;  %v379_v43 = vunpack.c.l.bf16 %v436_v30  ;;  %v380_v44 = vunpack.c.h.bf16 %v436_v30 }
  0x18   : > { %v406_v46 = vpack.c.bf16 %v251_v37, %v250_v36  ;;  %v411_v47 = vpack.c.bf16 %v253_v39, %v252_v38  ;;  %v383_v48 = vunpack.c.l.bf16 %v437_v35  ;;  %v384_v49 = vunpack.c.h.bf16 %v437_v35 }
  0x19   : > { %397 = vst [vmem:[%s540_s25] sm:$0xff] %v396_v41   ;;  %v218_v50 = vmul.f32 %v506_v0, %v379_v43  ;;  %v219_v51 = vmul.f32 %v506_v0, %v380_v44  ;;  %v387_v52 = vunpack.c.l.bf16 %v438_v40  ;;  %v388_v53 = vunpack.c.h.bf16 %v438_v40 }
  0x1a   : > { %440 = vst [vmem:[%s540_s25 + $0x8] sm:$0xff] %v401_v42   ;;  %v220_v54 = vmul.f32 %v506_v0, %v383_v48  ;;  %v221_v55 = vmul.f32 %v506_v0, %v384_v49  ;;  %v391_v56 = vunpack.c.l.bf16 %v439_v45  ;;  %v392_v57 = vunpack.c.h.bf16 %v439_v45 }
  0x1b   : > { %441 = vst [vmem:[%s540_s25 + $0x10] sm:$0xff] %v406_v46   ;;  %v238_v58 = vadd.f32 %v514_v6, %v218_v50  ;;  %v239_v59 = vadd.f32 %v514_v6, %v219_v51  ;;  %v222_v60 = vmul.f32 %v506_v0, %v387_v52  ;;  %v223_v61 = vmul.f32 %v506_v0, %v388_v53 }
  0x1c   : > { %442 = vst [vmem:[%s540_s25 + $0x18] sm:$0xff] %v411_v47   ;;  %v240_v62 = vadd.f32 %v514_v6, %v220_v54  ;;  %v241_v63 = vadd.f32 %v514_v6, %v221_v55  ;;  %v224_v1 = vmul.f32 %v506_v0, %v391_v56  ;;  %v225_v2 = vmul.f32 %v506_v0, %v392_v57 }
  0x1d   : > { %v254_v3 = vmax.f32 %v238_v58, 0.0  ;;  %v255_v4 = vmax.f32 %v239_v59, 0.0  ;;  %v242_v5 = vadd.f32 %v514_v6, %v222_v60  ;;  %v243_v7 = vadd.f32 %v514_v6, %v223_v61 }
  0x1e   : > { %v256_v8 = vmax.f32 %v240_v62, 0.0  ;;  %v257_v9 = vmax.f32 %v241_v63, 0.0  ;;  %v244_v10 = vadd.f32 %v514_v6, %v224_v1  ;;  %v245_v11 = vadd.f32 %v514_v6, %v225_v2 }
  0x1f   : > { %v416_v12 = vpack.c.bf16 %v255_v4, %v254_v3  ;;  %v258_v13 = vmax.f32 %v242_v5, 0.0  ;;  %v259_v14 = vmax.f32 %v243_v7, 0.0 }
  0x20   : > { %v421_v15 = vpack.c.bf16 %v257_v9, %v256_v8  ;;  %v260_v0 = vmax.f32 %v244_v10, 0.0  ;;  %v261_v16 = vmax.f32 %v245_v11, 0.0 }
  0x21   : > { %443 = vst [vmem:[%s540_s25 + $0x20] sm:$0xff] %v416_v12   ;;  %v426_v17 = vpack.c.bf16 %v259_v14, %v258_v13 }
  0x22   : > { %444 = vst [vmem:[%s540_s25 + $0x28] sm:$0xff] %v421_v15   ;;  %v431_v18 = vpack.c.bf16 %v261_v16, %v260_v0 }
  0x23   : > { %445 = vst [vmem:[%s540_s25 + $0x30] sm:$0xff] %v426_v17  }
  0x24   : > { %446 = vst [vmem:[%s540_s25 + $0x38] sm:$0xff] %v431_v18  }
  0x25 PF: > { %s13_s12 = sadd.s32 1, %s463_s12  }
  0x26   : > { %p10_p4 = scmp.ge.s32.totalorder %s13_s12, 6  }
  0x28   :  { %12 = sbr.rel (!%p10_p4) target bundleno = 1 (0x1), region = 62 }

// kernel: _lambda_.2
= control target key start
LH: loop header
LB: loop body
LE: loop exit
PB: predicated region body
PF: predicated region fallthrough
CT: control target
= control target key end

     0   :  { %s951_s15 = smov 0   ;;  %s953_s16 = smov 0   ;;  %s1072_s0 = inlined_call_operand.vmem [shape: bf16[512,128], index: 0, kind: input, shape index: {}]   ;;  %s1073_s1 = inlined_call_operand.vmem [shape: bf16[128,128], index: 1, kind: input, shape index: {}]   ;;  %s1074_s2 = inlined_call_operand.vmem [shape: bf16[512,128], index: 2, kind: output, shape index: {0}]   ;;  %s1075_s3 = inlined_call_operand.vmem [shape: f32[16,128], index: 3, kind: output, shape index: {1}]   ;;  %s1076_s4 = inlined_call_operand.vmem [shape: f32[16,128], index: 4, kind: output, shape index: {2}]  }
   0x1   :  { %s955_s17 = smov 0   ;;  %s957_s18 = smov 0  }
   0x2   :  { %s959_s19 = smov 0  }
   0x3 LB: > { %s24_s20 = sadd.s32 1, %s915_s17  ;;  %s27_s21 = sadd.s32 1, %s919_s18  ;;  %s923_s19 = sphi %s959_s19, %s15_s19   ;;  %s919_s18 = sphi %s957_s18, %s1080_s18   ;;  %s915_s17 = sphi %s955_s17, %s1079_s17   ;;  %s911_s16 = sphi %s953_s16, %s1078_s16   ;;  %s907_s15 = sphi %s951_s15, %s1077_s15  }
   0x4   : > { %p25_p0 = scmp.ge.s32.totalorder %s24_s20, 2  ;;  %p681_p1 = scmp.ge.s32.totalorder %s923_s19, 1 }
   0x5   : > { %p192_p2 = scmp.lt.s32.totalorder %s923_s19, 5 }
   0x6   : > { %s1082_s20 = smov (%p25_p0, %s24_s20), 0  ;;  %s1084_s21 = smov (!%p25_p0, %s27_s21), %s919_s18 }
   0x7   : > { %p193_p3 = pnand %p681_p1, %p192_p2  ;;  %p29_p4 = scmp.ge.s32.totalorder %s1084_s21, 2 }
   0x8   : > { %s682_s22 = sshll.u32 (!%p193_p3), %s911_s16, 1  ;;  %p250_p5 = scmp.lt.s32.totalorder (!%p193_p3), %s911_s16, 1 }
   0x9   : > { %s1086_s21 = smov (%p29_p4, %s1084_s21), 0  ;;  %196 = sbr.rel (%p193_p3) target bundleno = 251 (0xfb), region = 28 }
   0xa   : > { %s231_s23 = sadd.s32 (!%p193_p3), %s907_s15, %s682_s22  ;;  %p690_p7 = scmp.ne.s32.totalorder (!%p193_p3), %s907_s15, 0 }
   0xb   : > { %s683_s24 = sshll.u32 (!%p193_p3), %s231_s23, 4 }
   0xc   : > { %p233_p6 = scmp.lt.s32.totalorder (!%p193_p3), %s683_s24, 63 }
   0xe   : > { %s1088_s16 = smov (!%p250_p5, %s911_s16), 1  ;;  %s1090_s24 = smov (!%p233_p6, %s683_s24), 63 }
   0xf   : > { %s688_s25 = sshll.u32 %s1088_s16, 3  ;;  %s684_s26 = sshll.u32 %s1090_s24, 2 }
  0x10   : > { %s987_s29 = scalar_lea.vmem %s1075_s3, %s688_s25  ;;  %s992_s6 = scalar_lea.vmem %s1072_s0, %s684_s26 }
  0x11   : > { %s997_s9 = scalar_lea.vmem %s1074_s2, %s684_s26  ;;  %s1002_s12 = scalar_lea.vmem %s1076_s4, %s688_s25 }
  0x12   : > { %261 = sbr.rel (%p690_p7) target bundleno = 26 (0x1a), region = 32 }
  0x17   : > { %v925_v0 = vmov 0.0  }
  0x18   : > { %262 = vst [vmem:[%s987_s29] sm:$0xff] %v925_v0 }
  0x19   : > { %263 = vst [vmem:[%s1002_s12] sm:$0xff] %v925_v0 }
  0x1a PF: > { %v772_v1 = vld [vmem:[%s1073_s1 + $0x38] sm:$0xff]  ;;  %v771_v2 = vld [vmem:[%s1073_s1 + $0x30] sm:$0xff]  ;;  %v770_v3 = vld [vmem:[%s1073_s1 + $0x28] sm:$0xff] }
  0x1b   : > { %392 = vmatpush.bf16.msra.mxu0 %v772_v1  ;;  %820 = vmatpush.bf16.msra.mxu1 %v772_v1  ;;  %v769_v4 = vld [vmem:[%s1073_s1 + $0x20] sm:$0xff]  ;;  %v768_v5 = vld [vmem:[%s1073_s1 + $0x18] sm:$0xff]  ;;  %v767_v6 = vld [vmem:[%s1073_s1 + $0x10] sm:$0xff] }
  0x1c   : > { %821 = vmatpush.bf16.msra.mxu2 %v772_v1  ;;  %822 = vmatpush.bf16.msra.mxu3 %v772_v1  ;;  %v766_v7 = vld [vmem:[%s1073_s1 + $0x8] sm:$0xff]  ;;  %v765_v8 = vld [vmem:[%s1073_s1] sm:$0xff]  ;;  %v759_v10 = vld [vmem:[%s992_s6 + $0x10] sm:$0xff] }
  0x1d   : > { %v757_v9 = vld [vmem:[%s992_s6] sm:$0xff]  ;;  %v763_v12 = vld [vmem:[%s992_s6 + $0x30] sm:$0xff]  ;;  %v758_v13 = vld [vmem:[%s992_s6 + $0x8] sm:$0xff] }
  0x1e   : > { %v761_v11 = vld [vmem:[%s992_s6 + $0x20] sm:$0xff]  ;;  %v760_v14 = vld [vmem:[%s992_s6 + $0x18] sm:$0xff]  ;;  %v762_v15 = vld [vmem:[%s992_s6 + $0x28] sm:$0xff] }
  0x1f   : > { %393 = vmatpush.bf16.msra.mxu0 %v771_v2  ;;  %823 = vmatpush.bf16.msra.mxu1 %v771_v2  ;;  %v764_v16 = vld [vmem:[%s992_s6 + $0x38] sm:$0xff] }
  0x20   : > { %824 = vmatpush.bf16.msra.mxu2 %v771_v2  ;;  %825 = vmatpush.bf16.msra.mxu3 %v771_v2 }
  0x23   : > { %394 = vmatpush.bf16.msra.mxu0 %v770_v3  ;;  %826 = vmatpush.bf16.msra.mxu1 %v770_v3 }
  0x24   : > { %827 = vmatpush.bf16.msra.mxu2 %v770_v3  ;;  %828 = vmatpush.bf16.msra.mxu3 %v770_v3 }
  0x27   : > { %395 = vmatpush.bf16.msra.mxu0 %v769_v4  ;;  %829 = vmatpush.bf16.msra.mxu1 %v769_v4 }
  0x28   : > { %830 = vmatpush.bf16.msra.mxu2 %v769_v4  ;;  %831 = vmatpush.bf16.msra.mxu3 %v769_v4 }
  0x2b   : > { %396 = vmatpush.bf16.msra.mxu0 %v768_v5  ;;  %832 = vmatpush.bf16.msra.mxu1 %v768_v5 }
  0x2c   : > { %833 = vmatpush.bf16.msra.mxu2 %v768_v5  ;;  %834 = vmatpush.bf16.msra.mxu3 %v768_v5 }
  0x2f   : > { %397 = vmatpush.bf16.msra.mxu0 %v767_v6  ;;  %835 = vmatpush.bf16.msra.mxu1 %v767_v6 }
  0x30   : > { %836 = vmatpush.bf16.msra.mxu2 %v767_v6  ;;  %837 = vmatpush.bf16.msra.mxu3 %v767_v6 }
  0x33   : > { %398 = vmatpush.bf16.msra.mxu0 %v766_v7  ;;  %838 = vmatpush.bf16.msra.mxu1 %v766_v7 }
  0x34   : > { %839 = vmatpush.bf16.msra.mxu2 %v766_v7  ;;  %840 = vmatpush.bf16.msra.mxu3 %v766_v7 }
  0x37   : > { %399 = vmatpush.bf16.msra.mxu0 %v765_v8  ;;  %841 = vmatpush.bf16.msra.mxu1 %v765_v8 }
  0x38   : > { %842 = vmatpush.bf16.msra.mxu2 %v765_v8  ;;  %843 = vmatpush.bf16.msra.mxu3 %v765_v8 }
  0x3a   : > { %400 = vmatmul.bf16.vlgmr.msra.gmra.mxu0 %v757_v9  ;;  %410 = vmatmul.bf16.vlgmr.msra.gmra.mxu1 %v759_v10 }
  0x3b   : > { %420 = vmatmul.bf16.vlgmr.msra.gmra.mxu2 %v761_v11  ;;  %430 = vmatmul.bf16.vlgmr.msra.gmra.mxu3 %v763_v12 }
  0x4a   : > { %405 = vmatmul.bf16.gmra.mxu0 %v758_v13  ;;  %415 = vmatmul.bf16.gmra.mxu1 %v760_v14 }
  0x4b   : > { %425 = vmatmul.bf16.gmra.mxu2 %v762_v15  ;;  %435 = vmatmul.bf16.gmra.mxu3 %v764_v16 }
  0xb7   : > { %v401_v17 = vpop.f32.mrf.mxu0  ;;  %v411_v18 = vpop.f32.mrf.mxu1 }
  0xb8   : > { %v498_v32 = vmul.f32 %v401_v17, %v401_v17  ;;  %v502_v46 = vmul.f32 %v411_v18, %v411_v18 }
  0xbe   : > { %v421_v19 = vpop.f32.mrf.mxu2  ;;  %v1039_v20 = vpop.f32.mrf.mxu3 }
  0xbf   : > { %v403_v21 = vpop.f32.mrf.mxu0  ;;  %v413_v22 = vpop.f32.mrf.mxu1  ;;  %v506_v62 = vmul.f32 %v421_v19, %v421_v19  ;;  %v510_v10 = vmul.f32 %v1039_v20, %v1039_v20 }
  0xc0   : > { %v776_v23 = vpack.c.bf16 %v403_v21, %v401_v17  ;;  %v786_v24 = vpack.c.bf16 %v413_v22, %v411_v18  ;;  %v499_v31 = vmul.f32 %v403_v21, %v403_v21  ;;  %v474_v34 = vadd.f32 %v403_v21, %v401_v17 }
  0xc1   : > { %v503_v49 = vmul.f32 %v413_v22, %v413_v22 }
  0xc2   : > { %777 = vst [vmem:[%s997_s9] sm:$0xff] %v776_v23   ;;  %v514_v35 = vadd.f32 %v499_v31, %v498_v32  ;;  %v473_v32 = vld [vmem:[%s987_s29] sm:$0x1] }
  0xc3   : > { %814 = vst [vmem:[%s997_s9 + $0x10] sm:$0xff] %v786_v24  }
  0xc6   : > { %v423_v25 = vpop.f32.mrf.mxu2  ;;  %v433_v26 = vpop.f32.mrf.mxu3 }
  0xc7   : > { %v406_v27 = vpop.f32.mrf.mxu0  ;;  %v416_v28 = vpop.f32.mrf.mxu1  ;;  %v796_v29 = vpack.c.bf16 %v423_v25, %v421_v19  ;;  %v806_v30 = vpack.c.bf16 %v433_v26, %v1039_v20  ;;  %v507_v1 = vmul.f32 %v423_v25, %v423_v25  ;;  %v511_v13 = vmul.f32 %v433_v26, %v433_v26 }
  0xc8   : > { %v500_v33 = vmul.f32 %v406_v27, %v406_v27  ;;  %v475_v36 = vadd.f32 %v474_v34, %v406_v27  ;;  %v504_v52 = vmul.f32 %v416_v28, %v416_v28 }
  0xc9   : > { %816 = vst [vmem:[%s997_s9 + $0x20] sm:$0xff] %v796_v29  }
  0xca   : > { %818 = vst [vmem:[%s997_s9 + $0x30] sm:$0xff] %v806_v30   ;;  %v515_v39 = vadd.f32 %v514_v35, %v500_v33  ;;  %v497_v35 = vld [vmem:[%s1002_s12] sm:$0x1] }
  0xce   : > { %v426_v37 = vpop.f32.mrf.mxu2  ;;  %v436_v38 = vpop.f32.mrf.mxu3 }
  0xcf   : > { %v408_v40 = vpop.f32.mrf.mxu0  ;;  %v418_v41 = vpop.f32.mrf.mxu1  ;;  %v508_v5 = vmul.f32 %v426_v37, %v426_v37  ;;  %v512_v17 = vmul.f32 %v436_v38, %v436_v38 }
  0xd0   : > { %v781_v42 = vpack.c.bf16 %v408_v40, %v406_v27  ;;  %v476_v43 = vadd.f32 %v475_v36, %v408_v40  ;;  %v501_v44 = vmul.f32 %v408_v40, %v408_v40  ;;  %v791_v45 = vpack.c.bf16 %v418_v41, %v416_v28 }
  0xd1   : > { %v505_v60 = vmul.f32 %v418_v41, %v418_v41 }
  0xd2   : > { %813 = vst [vmem:[%s997_s9 + $0x8] sm:$0xff] %v781_v42   ;;  %v477_v47 = vadd.f32 %v476_v43, %v411_v18  ;;  %v516_v48 = vadd.f32 %v515_v39, %v501_v44 }
  0xd3   : > { %815 = vst [vmem:[%s997_s9 + $0x18] sm:$0xff] %v791_v45  }
  0xd4   : > { %v517_v50 = vadd.f32 %v516_v48, %v502_v46  ;;  %v478_v51 = vadd.f32 %v477_v47, %v413_v22 }
  0xd6   : > { %v479_v53 = vadd.f32 %v478_v51, %v416_v28  ;;  %v518_v54 = vadd.f32 %v517_v50, %v503_v49  ;;  %v428_v55 = vpop.f32.mrf.mxu2  ;;  %v438_v56 = vpop.f32.mrf.mxu3 }
  0xd7   : > { %v801_v57 = vpack.c.bf16 %v428_v55, %v426_v37  ;;  %v811_v58 = vpack.c.bf16 %v438_v56, %v436_v38  ;;  %v509_v9 = vmul.f32 %v428_v55, %v428_v55  ;;  %v513_v22 = vmul.f32 %v438_v56, %v438_v56 }
  0xd8   : > { %v480_v59 = vadd.f32 %v479_v53, %v418_v41  ;;  %v519_v61 = vadd.f32 %v518_v54, %v504_v52 }
  0xd9   : > { %817 = vst [vmem:[%s997_s9 + $0x28] sm:$0xff] %v801_v57  }
  0xda   : > { %v481_v63 = vadd.f32 %v480_v59, %v421_v19  ;;  %v520_v0 = vadd.f32 %v519_v61, %v505_v60  ;;  %819 = vst [vmem:[%s997_s9 + $0x38] sm:$0xff] %v811_v58  }
  0xdc   : > { %v521_v2 = vadd.f32 %v520_v0, %v506_v62  ;;  %v482_v3 = vadd.f32 %v481_v63, %v423_v25 }
  0xde   : > { %v483_v4 = vadd.f32 %v482_v3, %v426_v37  ;;  %v522_v6 = vadd.f32 %v521_v2, %v507_v1 }
  0xe0   : > { %v523_v7 = vadd.f32 %v522_v6, %v508_v5  ;;  %v484_v8 = vadd.f32 %v483_v4, %v428_v55 }
  0xe2   : > { %v485_v11 = vadd.f32 %v484_v8, %v1039_v20  ;;  %v524_v12 = vadd.f32 %v523_v7, %v509_v9 }
  0xe4   : > { %v525_v14 = vadd.f32 %v524_v12, %v510_v10  ;;  %v486_v15 = vadd.f32 %v485_v11, %v433_v26 }
  0xe6   : > { %v487_v16 = vadd.f32 %v486_v15, %v436_v38  ;;  %v526_v18 = vadd.f32 %v525_v14, %v511_v13 }
  0xe8   : > { %v527_v19 = vadd.f32 %v526_v18, %v512_v17  ;;  %v488_v21 = vadd.f32 %v487_v16, %v438_v56 }
  0xea   : > { %v489_v23 = vrot.slane %v488_v21, 4  ;;  %v528_v24 = vadd.f32 %v527_v19, %v513_v22 }
  0xec   : > { %v490_v25 = vadd.f32 %v489_v23, %v488_v21  ;;  %v529_v27 = vrot.slane %v528_v24, 4 }
  0xee   : > { %v491_v28 = vrot.slane %v490_v25, 2  ;;  %v530_v20 = vadd.f32 %v529_v27, %v528_v24 }
  0xf0   : > { %v492_v29 = vadd.f32 %v491_v28, %v490_v25  ;;  %v531_v30 = vrot.slane %v530_v20, 2 }
  0xf2   : > { %v493_v31 = vrot.slane %v492_v29, 1  ;;  %v532_v26 = vadd.f32 %v531_v30, %v530_v20 }
  0xf4   : > { %v494_v33 = vadd.f32 %v493_v31, %v492_v29  ;;  %v533_v34 = vrot.slane %v532_v26, 1 }
  0xf6   : > { %v495_v36 = vadd.f32 %v494_v33, %v473_v32  ;;  %v534_v37 = vadd.f32 %v533_v34, %v532_v26 }
  0xf8   : > { %496 = vst [vmem:[%s987_s29] sm:$0x1] %v495_v36  ;;  %v535_v38 = vadd.f32 %v534_v37, %v497_v35 }
  0xfa   : > { %536 = vst [vmem:[%s1002_s12] sm:$0x1] %v535_v38 }
  0xfb PF: > { %s15_s19 = sadd.s32 1, %s923_s19   ;;  %s1077_s15 = smov %s915_s17 }
  0xfc   : > { %p12_p8 = scmp.ge.s32.totalorder %s15_s19, 6   ;;  %s1078_s16 = smov %s919_s18 }
  0xfd   : > { %s1079_s17 = smov %s1082_s20  ;;  %s1080_s18 = smov %s1086_s21 }
  0xfe   :  { %14 = sbr.rel (!%p12_p8) target bundleno = 3 (0x3), region = 86 }

</bundles_post_ra>
